<compile_context>
chip_gen: v7x
topology: tpu7x:2x2x1
jax: 0.10.0
libtpu: 0.0.40
codegen_flags: <defaults>
</compile_context>

<pallas_src>
import functools

import jax
import jax.numpy as jnp
from jax.experimental import pallas as pl
from jax.experimental.pallas import tpu as pltpu


def affine_flow_kernel(x_ref, score_ref, scale_ref, inv_scale_ref, t_ref,
                       y_ref, score_out_ref, wgf_ref, *, inv_chw):
    # x_ref / score_ref : (TILE_N, F)  lane-dense, F multiple of 128
    # scale/inv_scale/t : (1, F)       pre-broadcast lane-dense params
    x = x_ref[...].astype(jnp.float32)
    score = score_ref[...].astype(jnp.float32)
    scale = scale_ref[...]                       # (1, F) f32
    inv_scale = inv_scale_ref[...]               # (1, F) f32
    t = t_ref[...]                               # (1, F) f32

    y = x * scale + t                            # (TILE_N, F)
    y_ref[...] = y.astype(y_ref.dtype)

    # score transforms with the inverse Jacobian (exact, no approx recip).
    score_out_ref[...] = (score * inv_scale).astype(score_out_ref.dtype)

    # WGF regularizer contribution: per-sample mean squared displacement.
    # Padded feature columns contribute exactly 0 (x=0, t=0 there).
    disp = y - x
    wgf = jnp.sum(disp * disp, axis=1, keepdims=True) * inv_chw   # (TILE_N, 1)
    wgf_ref[...] = wgf.astype(wgf_ref.dtype)


def _round_up(n, m):
    return ((n + m - 1) // m) * m


def _vmem_budget_bytes():
    """Generation-gated (vmem_limit_bytes, tile_budget_bytes)."""
    try:
        cap = pltpu.get_tpu_info().vmem_capacity_bytes
    except Exception:
        cap = 64 * 1024 * 1024  # conservative fallback
    if cap <= 64 * 1024 * 1024:
        # v7x: 64 MiB VMEM per TensorCore — leave headroom for scratch.
        limit = 48 * 1024 * 1024
    else:
        # v5e / v6e: 128 MiB physical VMEM — default scoped limit is lower.
        limit = 64 * 1024 * 1024
    budget = int(limit * 0.75)
    return limit, budget


def _choose_tile_n(n, row_bytes, budget_bytes, min_steps=2):
    """Batch tile: 4 big streams x 2 pipeline buffers of (tn, F) fit budget.

    Always returns a multiple of 8; never exceeds the budget-derived cap.
    The caller pads N up to a multiple of the returned tile.
    """
    n8 = _round_up(n, 8)
    max_rows = max(8, (budget_bytes // (8 * row_bytes)) // 8 * 8)
    tn = min(n8, max_rows)
    # Force >= min_steps grid steps when the batch allows it, so multi-TC
    # chips (v7x) shard the "parallel" axis across both cores.
    if n8 >= 8 * min_steps:
        tn = min(tn, max(8, (n8 // min_steps) // 8 * 8))
    return max(8, (tn // 8) * 8)


def affine_flow_layer(params, x, logpz, score, wgf_reg):
    """One flow layer: elementwise hot path in Pallas; scalar plumbing in JAX."""
    N, C, H, W = x.shape
    F = C * H * W
    F_pad = _round_up(F, 128)
    itemsize = x.dtype.itemsize

    # Lane-dense 2-D layout: sublanes <- batch tile, lanes <- C*H*W.
    x2 = x.reshape(N, F)
    s2 = score.reshape(N, F)

    # Pre-broadcast lane-dense parameter rows (only 2*C transcendentals,
    # computed once in the wrapper; the kernel does zero transcendentals).
    log_s = params["log_s"].astype(jnp.float32).reshape(C)
    t_c = params["t"].astype(jnp.float32).reshape(C)
    scale_vec = jnp.repeat(jnp.exp(log_s), H * W)[None, :]       # (1, F)
    inv_scale_vec = jnp.repeat(jnp.exp(-log_s), H * W)[None, :]  # (1, F)
    t_vec = jnp.repeat(t_c, H * W)[None, :]                      # (1, F)

    # Pad feature dim to a multiple of 128 (unmasked stores).  Padding keeps
    # wgf exact: x_pad = 0, t_pad = 0  =>  disp_pad = 0.
    if F_pad != F:
        fp = F_pad - F
        x2 = jnp.pad(x2, ((0, 0), (0, fp)))
        s2 = jnp.pad(s2, ((0, 0), (0, fp)))
        scale_vec = jnp.pad(scale_vec, ((0, 0), (0, fp)), constant_values=1.0)
        inv_scale_vec = jnp.pad(inv_scale_vec, ((0, 0), (0, fp)),
                                constant_values=1.0)
        t_vec = jnp.pad(t_vec, ((0, 0), (0, fp)))

    vmem_limit, budget = _vmem_budget_bytes()
    row_bytes = F_pad * itemsize
    tn = _choose_tile_n(N, row_bytes, budget, min_steps=2)

    # Pad batch so the grid divides exactly (no silent trailing-row drop).
    n_pad = _round_up(max(N, tn), tn)
    if n_pad != N:
        x2 = jnp.pad(x2, ((0, n_pad - N), (0, 0)))
        s2 = jnp.pad(s2, ((0, n_pad - N), (0, 0)))
    grid = (n_pad // tn,)

    out_shapes = (
        jax.ShapeDtypeStruct((n_pad, F_pad), x.dtype),
        jax.ShapeDtypeStruct((n_pad, F_pad), score.dtype),
        jax.ShapeDtypeStruct((n_pad, 1), jnp.float32),
    )

    cost = pl.CostEstimate(
        flops=5 * n_pad * F_pad,
        transcendentals=0,
        bytes_accessed=4 * n_pad * F_pad * itemsize + 3 * F_pad * 4 + n_pad * 4,
    )

    kernel = functools.partial(affine_flow_kernel, inv_chw=1.0 / float(F))

    y2, score2, wgf_c = pl.pallas_call(
        kernel,
        out_shape=out_shapes,
        grid_spec=pltpu.PrefetchScalarGridSpec(
            num_scalar_prefetch=0,
            grid=grid,
            in_specs=[
                pl.BlockSpec((tn, F_pad), lambda i: (i, 0)),
                pl.BlockSpec((tn, F_pad), lambda i: (i, 0)),
                pl.BlockSpec((1, F_pad), lambda i: (0, 0)),
                pl.BlockSpec((1, F_pad), lambda i: (0, 0)),
                pl.BlockSpec((1, F_pad), lambda i: (0, 0)),
            ],
            out_specs=(
                pl.BlockSpec((tn, F_pad), lambda i: (i, 0)),
                pl.BlockSpec((tn, F_pad), lambda i: (i, 0)),
                pl.BlockSpec((tn, 1), lambda i: (i, 0)),
            ),
        ),
        compiler_params=pltpu.CompilerParams(
            dimension_semantics=("parallel",),      # v7x: shard over 2 TCs
            vmem_limit_bytes=vmem_limit,
        ),
        cost_estimate=cost,
    )(x2, s2, scale_vec, inv_scale_vec, t_vec)

    y = y2[:N, :F].reshape(N, C, H, W)
    score_out = score2[:N, :F].reshape(N, C, H, W)

    # Scalar-sized bookkeeping (constant logdet, (N,1) adds) stays in plain
    # JAX: avoids lane-1 VMEM traffic and an in-kernel reduction of a constant.
    logdet = H * W * jnp.sum(params["log_s"].astype(jnp.float32))
    logpz_out = logpz - logdet
    wgf_out = wgf_reg + wgf_c[:N].astype(wgf_reg.dtype)
    return y, logpz_out, score_out, wgf_out


class SequentialFlow:
    """JAX/Pallas port of the PyTorch SequentialFlow container.

    NOTE: the reference forward() `return`s inside its for-loop, so only
    chain[0] is ever applied.  We reproduce that behavior exactly.
    (An empty chain returns None, matching the reference.)
    """

    def __init__(self, layers_list):
        self.chain = list(layers_list)

    def forward(self, x, logpz, score, wgf_reg):
        for i in range(len(self.chain)):
            x, logpz, score, wgf_reg = self.chain[i](x, logpz, score, wgf_reg)
            return (x, logpz, score, wgf_reg)   # early return, as in reference

    __call__ = forward


def _reference_layer(params, x, logpz, score, wgf_reg):
    """Pure-JAX reference for correctness checking."""
    C, H, W = x.shape[1], x.shape[2], x.shape[3]
    log_s = params["log_s"].reshape(1, C, 1, 1)
    t = params["t"].reshape(1, C, 1, 1)
    y = x * jnp.exp(log_s) + t
    logpz_o = logpz - H * W * jnp.sum(params["log_s"])
    score_o = score * jnp.exp(-log_s)
    wgf_o = wgf_reg + jnp.mean((y - x) ** 2, axis=(1, 2, 3))[:, None]
    return y, logpz_o, score_o, wgf_o


if __name__ == "__main__":
    N, C, H, W = 2, 4, 16, 16
    key = jax.random.PRNGKey(0)
    kx, klp, ksc, kp1, kp2, kp3 = jax.random.split(key, 6)

    x = jax.random.normal(kx, (N, C, H, W), dtype=jnp.float32)
    logpz = jax.random.normal(klp, (N, 1), dtype=jnp.float32)
    score = jax.random.normal(ksc, (N, C, H, W), dtype=jnp.float32)
    wgf_reg = jnp.zeros((N, 1), dtype=jnp.float32)

    # Deterministic synthetic parameters for a chain of 3 affine flow layers.
    def make_params(k):
        ks, kt = jax.random.split(k)
        return {
            "log_s": 0.1 * jax.random.normal(ks, (C,), dtype=jnp.float32),
            "t": 0.1 * jax.random.normal(kt, (C,), dtype=jnp.float32),
        }

    layer_params = [make_params(k) for k in (kp1, kp2, kp3)]
    layers = [functools.partial(affine_flow_layer, p) for p in layer_params]
    model = SequentialFlow(layers)

    y, logpz_o, score_o, wgf_o = model(x, logpz, score, wgf_reg)
    jax.block_until_ready((y, logpz_o, score_o, wgf_o))

    # Correctness check vs pure-JAX reference (only chain[0] is applied).
    y_r, lp_r, sc_r, wg_r = _reference_layer(layer_params[0], x, logpz, score, wgf_reg)
    assert jnp.allclose(y, y_r, atol=1e-5), "x mismatch"
    assert jnp.allclose(logpz_o, lp_r, atol=1e-5), "logpz mismatch"
    assert jnp.allclose(score_o, sc_r, atol=1e-5), "score mismatch"
    assert jnp.allclose(wgf_o, wg_r, atol=1e-5), "wgf_reg mismatch"
    assert y.shape == (N, C, H, W) and logpz_o.shape == (N, 1)
    assert score_o.shape == (N, C, H, W) and wgf_o.shape == (N, 1)

    print("KERNEL_OK")
</pallas_src>

<mosaic_0001>
module attributes {stable_mosaic.version = 11 : i64} {
  func.func @affine_flow_kernel(%arg0: i32, %arg1: memref<8x1024xf32, #tpu.memory_space<vmem>>, %arg2: memref<8x1024xf32, #tpu.memory_space<vmem>>, %arg3: memref<1x1024xf32, #tpu.memory_space<vmem>>, %arg4: memref<1x1024xf32, #tpu.memory_space<vmem>>, %arg5: memref<1x1024xf32, #tpu.memory_space<vmem>>, %arg6: memref<8x1024xf32, #tpu.memory_space<vmem>>, %arg7: memref<8x1024xf32, #tpu.memory_space<vmem>>, %arg8: memref<8x1xf32, #tpu.memory_space<vmem>>) attributes {dimension_semantics = [#tpu.dimension_semantics<parallel>], iteration_bounds = array<i64: 1>, scalar_prefetch = 0 : i64, scratch_operands = 0 : i64, tpu.core_type = #tpu.core_type<tc>, window_params = [{transform_indices = @transform_0, window_bounds = array<i64: 8, 1024>}, {transform_indices = @transform_1, window_bounds = array<i64: 8, 1024>}, {pipeline_mode = #tpu.pipeline_mode<synchronous>, transform_indices = @transform_2, window_bounds = array<i64: 1, 1024>}, {pipeline_mode = #tpu.pipeline_mode<synchronous>, transform_indices = @transform_3, window_bounds = array<i64: 1, 1024>}, {pipeline_mode = #tpu.pipeline_mode<synchronous>, transform_indices = @transform_4, window_bounds = array<i64: 1, 1024>}, {transform_indices = @transform_5, window_bounds = array<i64: 8, 1024>}, {transform_indices = @transform_6, window_bounds = array<i64: 8, 1024>}, {transform_indices = @transform_7, window_bounds = array<i64: 8, 1>}]} {
    %c0 = arith.constant 0 : index
    %c0_0 = arith.constant 0 : index
    %0 = vector.load %arg1[%c0, %c0_0] : memref<8x1024xf32, #tpu.memory_space<vmem>>, vector<8x1024xf32>
    %c0_1 = arith.constant 0 : index
    %c0_2 = arith.constant 0 : index
    %1 = vector.load %arg2[%c0_1, %c0_2] : memref<8x1024xf32, #tpu.memory_space<vmem>>, vector<8x1024xf32>
    %c0_3 = arith.constant 0 : index
    %c0_4 = arith.constant 0 : index
    %2 = vector.load %arg3[%c0_3, %c0_4] : memref<1x1024xf32, #tpu.memory_space<vmem>>, vector<1x1024xf32>
    %c0_5 = arith.constant 0 : index
    %c0_6 = arith.constant 0 : index
    %3 = vector.load %arg4[%c0_5, %c0_6] : memref<1x1024xf32, #tpu.memory_space<vmem>>, vector<1x1024xf32>
    %c0_7 = arith.constant 0 : index
    %c0_8 = arith.constant 0 : index
    %4 = vector.load %arg5[%c0_7, %c0_8] : memref<1x1024xf32, #tpu.memory_space<vmem>>, vector<1x1024xf32>
    %5 = vector.broadcast %2 : vector<1x1024xf32> to vector<8x1024xf32>
    %6 = arith.mulf %0, %5 : vector<8x1024xf32>
    %7 = vector.broadcast %4 : vector<1x1024xf32> to vector<8x1024xf32>
    %8 = arith.addf %6, %7 : vector<8x1024xf32>
    %c0_9 = arith.constant 0 : index
    %c0_10 = arith.constant 0 : index
    %9 = vector.load %arg6[%c0_9, %c0_10] : memref<8x1024xf32, #tpu.memory_space<vmem>>, vector<8x1024xf32>
    tpu.vector_store %arg6[%c0_9, %c0_10], %8 {strides = array<i32>} : memref<8x1024xf32, #tpu.memory_space<vmem>>, vector<8x1024xf32>,
    %10 = vector.broadcast %3 : vector<1x1024xf32> to vector<8x1024xf32>
    %11 = arith.mulf %1, %10 : vector<8x1024xf32>
    %c0_11 = arith.constant 0 : index
    %c0_12 = arith.constant 0 : index
    %12 = vector.load %arg7[%c0_11, %c0_12] : memref<8x1024xf32, #tpu.memory_space<vmem>>, vector<8x1024xf32>
    tpu.vector_store %arg7[%c0_11, %c0_12], %11 {strides = array<i32>} : memref<8x1024xf32, #tpu.memory_space<vmem>>, vector<8x1024xf32>,
    %13 = arith.subf %8, %0 : vector<8x1024xf32>
    %14 = arith.mulf %13, %13 : vector<8x1024xf32>
    %cst = arith.constant dense<0.000000e+00> : vector<8xf32>
    %15 = vector.multi_reduction <add>, %14, %cst [1] : vector<8x1024xf32> to vector<8xf32>
    %16 = vector.shape_cast %15 : vector<8xf32> to vector<8x1xf32>
    %cst_13 = arith.constant 9.765625E-4 : f32
    %17 = vector.broadcast %cst_13 : f32 to vector<8x1xf32>
    %18 = arith.mulf %16, %17 : vector<8x1xf32>
    %c0_14 = arith.constant 0 : index
    %c0_15 = arith.constant 0 : index
    %19 = vector.load %arg8[%c0_14, %c0_15] : memref<8x1xf32, #tpu.memory_space<vmem>>, vector<8x1xf32>
    tpu.vector_store %arg8[%c0_14, %c0_15], %18 {strides = array<i32>} : memref<8x1xf32, #tpu.memory_space<vmem>>, vector<8x1xf32>,
    return
  }
  func.func @transform_0(%arg0: i32) -> (i32, i32) {
    %c0_i32 = arith.constant 0 : i32
    %c0_i32_0 = arith.constant 0 : i32
    return %arg0, %c0_i32 : i32, i32
  }
  func.func @transform_1(%arg0: i32) -> (i32, i32) {
    %c0_i32 = arith.constant 0 : i32
    %c0_i32_0 = arith.constant 0 : i32
    return %arg0, %c0_i32 : i32, i32
  }
  func.func @transform_2(%arg0: i32) -> (i32, i32) {
    %c0_i32 = arith.constant 0 : i32
    %c0_i32_0 = arith.constant 0 : i32
    %c0_i32_1 = arith.constant 0 : i32
    return %c0_i32, %c0_i32_0 : i32, i32
  }
  func.func @transform_3(%arg0: i32) -> (i32, i32) {
    %c0_i32 = arith.constant 0 : i32
    %c0_i32_0 = arith.constant 0 : i32
    %c0_i32_1 = arith.constant 0 : i32
    return %c0_i32, %c0_i32_0 : i32, i32
  }
  func.func @transform_4(%arg0: i32) -> (i32, i32) {
    %c0_i32 = arith.constant 0 : i32
    %c0_i32_0 = arith.constant 0 : i32
    %c0_i32_1 = arith.constant 0 : i32
    return %c0_i32, %c0_i32_0 : i32, i32
  }
  func.func @transform_5(%arg0: i32) -> (i32, i32) {
    %c0_i32 = arith.constant 0 : i32
    %c0_i32_0 = arith.constant 0 : i32
    return %arg0, %c0_i32 : i32, i32
  }
  func.func @transform_6(%arg0: i32) -> (i32, i32) {
    %c0_i32 = arith.constant 0 : i32
    %c0_i32_0 = arith.constant 0 : i32
    return %arg0, %c0_i32 : i32, i32
  }
  func.func @transform_7(%arg0: i32) -> (i32, i32) {
    %c0_i32 = arith.constant 0 : i32
    %c0_i32_0 = arith.constant 0 : i32
    return %arg0, %c0_i32 : i32, i32
  }
}

</mosaic_0001>

<bundles_post_ra>
// kernel: tpu_custom_call.1
= control target key start
LH: loop header
LB: loop body
LE: loop exit
PB: predicated region body
PF: predicated region fallthrough
CT: control target
= control target key end

     0   :  { %13 = vsyncpa [#allocation3], 0  ;;  %s659_s0 = inlined_call_operand.hbm [shape: f32[8,1024], index: 0, kind: input, shape index: {}]   ;;  %s660_s1 = inlined_call_operand.hbm [shape: f32[8,1024], index: 1, kind: input, shape index: {}]   ;;  %s661_s2 = inlined_call_operand.hbm [shape: f32[1,1024], index: 2, kind: input, shape index: {}]   ;;  %s662_s3 = inlined_call_operand.vmem [shape: f32[1,1024], index: 3, kind: input, shape index: {}]   ;;  %s663_s4 = inlined_call_operand.hbm [shape: f32[1,1024], index: 4, kind: input, shape index: {}]   ;;  %s664_s5 = inlined_call_operand.hbm [shape: f32[8,1024], index: 5, kind: output, shape index: {0}]   ;;  %s665_s6 = inlined_call_operand.hbm [shape: f32[8,1024], index: 6, kind: output, shape index: {1}]   ;;  %s666_s7 = inlined_call_operand.vmem [shape: f32[8,1], index: 7, kind: output, shape index: {2}]  }
   0x1   :  { %14 = vsyncpa [#allocation6], 0 }
   0x2   :  { %15 = vsyncpa [#allocation9], 0 }
   0x3   :  { %16 = vsyncpa [#allocation4], 0 }
   0x4   :  { %17 = vsyncpa [#allocation12], 0  ;;  %s465_s24 = smov [#allocation5]   ;;  %s466_s26 = smov [#allocation2]  }
   0x5   :  { %s34_s25 = sshll.u32 %s465_s24, 4  ;;  %s24_s27 = sshll.u32 %s466_s26, 4  ;;  %s35_s25 = int_to_ptr.vmem [resolvable:$true] %s34_s25  ;;  %s25_s27 = int_to_ptr.vmem [resolvable:$true] %s24_s27 }
   0x6   :  { %s323_s30 = scalar_lea.hbm %s660_s1, 1024 }
   0x7   :  { %p324_p0 = scmp.ne.s32.totalorder %s660_s1, %s323_s30  ;;  %p327_p1 = scmp.lt.u32.totalorder %s323_s30, %s660_s1 }
   0x9   :  { %p329_p2 = pnand %p327_p1, %p324_p0 }
   0xb   :  { %332 = shalt.err (!%p329_p2)
}
   0xc   :  { %s333_s12 = scalar_lea.vmem %s35_s25, 1024  ;;  %p338_p4 = scmp.lt.s32.totalorder %s35_s25, %s35_s25 }
   0xd   :  { %p334_p3 = scmp.ne.s32.totalorder %s35_s25, %s333_s12  ;;  %p339_p5 = scmp.lt.s32.totalorder %s333_s12, %s333_s12 }
   0xf   :  { %p340_p6 = por %p339_p5, %p338_p4 }
  0x11   :  { %p341_p7 = pnand %p340_p6, %p334_p3 }
  0x13   :  { %344 = shalt.err (!%p341_p7)
}
  0x14   :  { %37 = dma.hbm_to_vmem [thread:$0]  %s660_s1, 1024, %s35_s25, [#allocation6]  }
  0x15   :  { %s345_s17 = scalar_lea.hbm %s659_s0, 1024 }
  0x16   :  { %p346_p8 = scmp.ne.s32.totalorder %s659_s0, %s345_s17  ;;  %p349_p9 = scmp.lt.u32.totalorder %s345_s17, %s659_s0 }
  0x18   :  { %p351_p10 = pnand %p349_p9, %p346_p8 }
  0x1a   :  { %354 = shalt.err (!%p351_p10)
}
  0x1b   :  { %s355_s22 = scalar_lea.vmem %s25_s27, 1024  ;;  %p360_p12 = scmp.lt.s32.totalorder %s25_s27, %s25_s27 }
  0x1c   :  { %p356_p11 = scmp.ne.s32.totalorder %s25_s27, %s355_s22  ;;  %p361_p13 = scmp.lt.s32.totalorder %s355_s22, %s355_s22 }
  0x1e   :  { %p362_p0 = por %p361_p13, %p360_p12 }
  0x20   :  { %p363_p1 = pnand %p362_p0, %p356_p11 }
  0x22   :  { %366 = shalt.err (!%p363_p1)
}
  0x23   :  { %27 = dma.hbm_to_vmem [thread:$0]  %s659_s0, 1024, %s25_s27, [#allocation3]  }
  0x24   :  { %s467_s24 = smov [#allocation7]   ;;  %s468_s26 = smov [#allocation8]  }
  0x25   :  { %s44_s25 = sshll.u32 %s467_s24, 4  ;;  %s56_s28 = sshll.u32 %s468_s26, 4  ;;  %s45_s25 = int_to_ptr.vmem [resolvable:$true] %s44_s25  ;;  %s57_s28 = int_to_ptr.vmem [resolvable:$true] %s56_s28 }
  0x26   :  { %s367_s8 = scalar_lea.hbm %s661_s2, 128 }
  0x27   :  { %p368_p2 = scmp.ne.s32.totalorder %s661_s2, %s367_s8  ;;  %p371_p3 = scmp.lt.u32.totalorder %s367_s8, %s661_s2 }
  0x29   :  { %p373_p4 = pnand %p371_p3, %p368_p2 }
  0x2b   :  { %376 = shalt.err (!%p373_p4)
}
  0x2c   :  { %s377_s0 = scalar_lea.vmem %s45_s25, 128  ;;  %p382_p6 = scmp.lt.s32.totalorder %s45_s25, %s45_s25 }
  0x2d   :  { %p378_p5 = scmp.ne.s32.totalorder %s45_s25, %s377_s0  ;;  %p383_p7 = scmp.lt.s32.totalorder %s377_s0, %s377_s0 }
  0x2f   :  { %p384_p8 = por %p383_p7, %p382_p6 }
  0x31   :  { %p385_p9 = pnand %p384_p8, %p378_p5 }
  0x33   :  { %388 = shalt.err (!%p385_p9)
}
  0x34   :  { %47 = dma.hbm_to_vmem [thread:$0]  %s661_s2, 128, %s45_s25, [#allocation6]  }
  0x35   :  { %s389_s16 = scalar_lea.hbm %s663_s4, 128 }
  0x36   :  { %p390_p10 = scmp.ne.s32.totalorder %s663_s4, %s389_s16  ;;  %p393_p11 = scmp.lt.u32.totalorder %s389_s16, %s663_s4 }
  0x38   :  { %p395_p12 = pnand %p393_p11, %p390_p10 }
  0x3a   :  { %398 = shalt.err (!%p395_p12)
}
  0x3b   :  { %s399_s21 = scalar_lea.vmem %s57_s28, 128  ;;  %p404_p0 = scmp.lt.s32.totalorder %s57_s28, %s57_s28 }
  0x3c   :  { %p400_p13 = scmp.ne.s32.totalorder %s57_s28, %s399_s21  ;;  %p405_p1 = scmp.lt.s32.totalorder %s399_s21, %s399_s21 }
  0x3e   :  { %p406_p2 = por %p405_p1, %p404_p0 }
  0x40   :  { %p407_p3 = pnand %p406_p2, %p400_p13 }
  0x42   :  { %410 = shalt.err (!%p407_p3)
}
  0x43   :  { %59 = dma.hbm_to_vmem [thread:$0]  %s663_s4, 128, %s57_s28, [#allocation9]  }
  0x44   :  { %455 = dma.done.wait [#allocation3], 1024  }
  0x45   :  { %456 = vsyncadd [#allocation3], 4294966272 }
  0x46   :  { %457 = dma.done.wait [#allocation6], 1152  }
  0x47   :  { %458 = vsyncadd [#allocation6], 4294966144 }
  0x48   :  { %459 = dma.done.wait [#allocation9], 128  }
  0x49   :  { %460 = vsyncadd [#allocation9], 4294967168  ;;  %v92_v0 = vlaneseq  ;;  %v72_v10 = vld [vmem:[#allocation2] sm:$0xff]  ;;  %v73_v11 = vld [vmem:[#allocation2 + $0x8] sm:$0xff]  ;;  %s470_s24 = smov [#allocation11]  }
  0x4a   :  { %v74_v12 = vld [vmem:[#allocation2 + $0x10] sm:$0xff]  ;;  %v575_v13 = vld [vmem:[#allocation2 + $0x18] sm:$0xff]  ;;  %v577_v14 = vld [vmem:[#allocation2 + $0x20] sm:$0xff]  ;;  %s298_s25 = sshll.u32 %s470_s24, 4  ;;  %s299_s25 = int_to_ptr.vmem [resolvable:$true] %s298_s25 }
  0x4b   :  { %v93_v1 = vshrl.u32 %v92_v0, 7  ;;  %v88_v15 = vld [vmem:[#allocation7] sm:$0xff]  ;;  %v579_v16 = vld [vmem:[#allocation2 + $0x28] sm:$0xff]  ;;  %v581_v17 = vld [vmem:[#allocation2 + $0x30] sm:$0xff] }
  0x4c   :  { %v583_v18 = vld [vmem:[#allocation2 + $0x38] sm:$0xff]  ;;  %v90_v23 = vld [vmem:[#allocation8] sm:$0xff]  ;;  %v605_v40 = vld [vmem:[%s662_s3] sm:$0xff]  ;;  %s469_s3 = smov [#allocation10]  }
  0x4d   :  { %v559_v2 = vsub.s32 0, %v93_v1  ;;  %v561_v3 = vsub.s32 1, %v93_v1  ;;  %v563_v4 = vsub.s32 2, %v93_v1  ;;  %v565_v5 = vsub.s32 3, %v93_v1  ;;  %v83_v49 = vld [vmem:[#allocation5 + $0x18] sm:$0xff]  ;;  %v84_v50 = vld [vmem:[#allocation5 + $0x20] sm:$0xff] }
  0x4e   :  { %v567_v6 = vsub.s32 4, %v93_v1  ;;  %v569_v7 = vsub.s32 5, %v93_v1  ;;  %v571_v8 = vsub.s32 6, %v93_v1  ;;  %v573_v9 = vsub.s32 7, %v93_v1  ;;  %v85_v55 = vld [vmem:[#allocation5 + $0x28] sm:$0xff]  ;;  %v86_v56 = vld [vmem:[#allocation5 + $0x30] sm:$0xff] }
  0x4f   :  { %v95_v19 = vrot.slane %v88_v15, %v559_v2  ;;  %v99_v20 = vrot.slane %v88_v15, %v561_v3  ;;  %v103_v21 = vrot.slane %v88_v15, %v563_v4  ;;  %v107_v22 = vrot.slane %v88_v15, %v565_v5  ;;  %v87_v57 = vld [vmem:[#allocation5 + $0x38] sm:$0xff]  ;;  %s288_s23 = sshll.u32 %s469_s3, 4  ;;  %s289_s23 = int_to_ptr.vmem [resolvable:$true] %s288_s23 }
  0x50   :  { %v111_v24 = vrot.slane %v88_v15, %v567_v6  ;;  %v115_v25 = vrot.slane %v88_v15, %v569_v7  ;;  %v119_v26 = vrot.slane %v88_v15, %v571_v8  ;;  %v123_v27 = vrot.slane %v88_v15, %v573_v9  ;;  %s411_s26 = scalar_lea.vmem %s289_s23, 1024  ;;  %p416_p5 = scmp.lt.s32.totalorder %s289_s23, %s289_s23 }
  0x51   :  { %v132_v28 = vmul.f32 %v95_v19, %v72_v10  ;;  %v133_v29 = vmul.f32 %v99_v20, %v73_v11  ;;  %v134_v30 = vmul.f32 %v103_v21, %v74_v12  ;;  %v135_v31 = vmul.f32 %v107_v22, %v575_v13  ;;  %p412_p4 = scmp.ne.s32.totalorder %s289_s23, %s411_s26  ;;  %p417_p6 = scmp.lt.s32.totalorder %s411_s26, %s411_s26 }
  0x52   :  { %v136_v32 = vmul.f32 %v111_v24, %v577_v14  ;;  %v137_v33 = vmul.f32 %v115_v25, %v579_v16  ;;  %v138_v34 = vmul.f32 %v119_v26, %v581_v17  ;;  %v139_v35 = vmul.f32 %v123_v27, %v583_v18 }
  0x53   :  { %v144_v36 = vrot.slane %v90_v23, %v559_v2  ;;  %v148_v37 = vrot.slane %v90_v23, %v561_v3  ;;  %v152_v38 = vrot.slane %v90_v23, %v563_v4  ;;  %v156_v39 = vrot.slane %v90_v23, %v565_v5  ;;  %p418_p7 = por %p417_p6, %p416_p5 }
  0x54   :  { %v160_v41 = vrot.slane %v90_v23, %v567_v6  ;;  %v164_v42 = vrot.slane %v90_v23, %v569_v7  ;;  %v168_v43 = vrot.slane %v90_v23, %v571_v8  ;;  %v172_v44 = vrot.slane %v90_v23, %v573_v9 }
  0x55   :  { %v181_v45 = vadd.f32 %v144_v36, %v132_v28  ;;  %v182_v46 = vadd.f32 %v148_v37, %v133_v29  ;;  %v183_v47 = vadd.f32 %v152_v38, %v134_v30  ;;  %v184_v48 = vadd.f32 %v156_v39, %v135_v31  ;;  %p419_p8 = pnand %p418_p7, %p412_p4 }
  0x56   :  { %v185_v51 = vadd.f32 %v160_v41, %v136_v32  ;;  %v186_v52 = vadd.f32 %v164_v42, %v137_v33  ;;  %v187_v53 = vadd.f32 %v168_v43, %v138_v34  ;;  %v188_v54 = vadd.f32 %v172_v44, %v139_v35  ;;  %v80_v34 = vld [vmem:[#allocation5] sm:$0xff]  ;;  %v82_v35 = vld [vmem:[#allocation5 + $0x10] sm:$0xff] }
  0x57   :  { %189 = vst [vmem:[#allocation10] sm:$0xff] %v181_v45  ;;  %190 = vst [vmem:[#allocation10 + $0x8] sm:$0xff] %v182_v46  ;;  %v213_v58 = vrot.slane %v605_v40, %v565_v5  ;;  %v217_v59 = vrot.slane %v605_v40, %v567_v6  ;;  %v221_v60 = vrot.slane %v605_v40, %v569_v7 }
  0x58   :  { %191 = vst [vmem:[#allocation10 + $0x10] sm:$0xff] %v183_v47  ;;  %192 = vst [vmem:[#allocation10 + $0x18] sm:$0xff] %v184_v48  ;;  %v225_v61 = vrot.slane %v605_v40, %v571_v8  ;;  %v229_v62 = vrot.slane %v605_v40, %v573_v9  ;;  %v254_v0 = vsub.f32 %v181_v45, %v72_v10 }
  0x59   :  { %193 = vst [vmem:[#allocation10 + $0x20] sm:$0xff] %v185_v51  ;;  %194 = vst [vmem:[#allocation10 + $0x28] sm:$0xff] %v186_v52  ;;  %v241_v63 = vmul.f32 %v213_v58, %v83_v49  ;;  %v255_v1 = vsub.f32 %v182_v46, %v73_v11  ;;  %v256_v5 = vsub.f32 %v183_v47, %v74_v12 }
  0x5a   :  { %195 = vst [vmem:[#allocation10 + $0x30] sm:$0xff] %v187_v53  ;;  %196 = vst [vmem:[#allocation10 + $0x38] sm:$0xff] %v188_v54  ;;  %v242_v15 = vmul.f32 %v217_v59, %v84_v50  ;;  %v243_v19 = vmul.f32 %v221_v60, %v85_v55  ;;  %v244_v20 = vmul.f32 %v225_v61, %v86_v56 }
  0x5b   :  { %v245_v21 = vmul.f32 %v229_v62, %v87_v57  ;;  %v257_v22 = vsub.f32 %v184_v48, %v575_v13  ;;  %249 = vst [vmem:[#allocation11 + $0x18] sm:$0xff] %v241_v63  ;;  %v258_v6 = vsub.f32 %v185_v51, %v577_v14  ;;  %v262_v7 = vmul.f32 %v254_v0, %v254_v0 }
  0x5c   :  { %251 = vst [vmem:[#allocation11 + $0x28] sm:$0xff] %v243_v19  ;;  %252 = vst [vmem:[#allocation11 + $0x30] sm:$0xff] %v244_v20  ;;  %v263_v8 = vmul.f32 %v255_v1, %v255_v1  ;;  %v264_v23 = vmul.f32 %v256_v5, %v256_v5  ;;  %v259_v9 = vsub.f32 %v186_v52, %v579_v16 }
  0x5d   :  { %253 = vst [vmem:[#allocation11 + $0x38] sm:$0xff] %v245_v21  ;;  %250 = vst [vmem:[#allocation11 + $0x20] sm:$0xff] %v242_v15  ;;  %v265_v10 = vmul.f32 %v257_v22, %v257_v22  ;;  %v260_v12 = vsub.f32 %v187_v53, %v581_v17  ;;  %v266_v24 = vmul.f32 %v258_v6, %v258_v6 }
  0x5e   :  { %v270_v11 = vadd.f32 %v263_v8, %v262_v7  ;;  %v261_v13 = vsub.f32 %v188_v54, %v583_v18  ;;  %v267_v26 = vmul.f32 %v259_v9, %v259_v9  ;;  %v201_v16 = vrot.slane %v605_v40, %v559_v2  ;;  %v81_v18 = vld [vmem:[#allocation5 + $0x8] sm:$0xff] }
  0x5f   :  { %v268_v28 = vmul.f32 %v260_v12, %v260_v12  ;;  %v205_v33 = vrot.slane %v605_v40, %v561_v3  ;;  %v209_v17 = vrot.slane %v605_v40, %v563_v4 }
  0x60   :  { %v271_v25 = vadd.f32 %v270_v11, %v264_v23  ;;  %v269_v30 = vmul.f32 %v261_v13, %v261_v13  ;;  %v238_v36 = vmul.f32 %v201_v16, %v80_v34 }
  0x61   :  { %v239_v37 = vmul.f32 %v205_v33, %v81_v18  ;;  %v240_v38 = vmul.f32 %v209_v17, %v82_v35 }
  0x62   :  { %v272_v27 = vadd.f32 %v271_v25, %v265_v10  ;;  %246 = vst [vmem:[#allocation11] sm:$0xff] %v238_v36 }
  0x63   :  { %247 = vst [vmem:[#allocation11 + $0x8] sm:$0xff] %v239_v37  ;;  %248 = vst [vmem:[#allocation11 + $0x10] sm:$0xff] %v240_v38 }
  0x64   :  { %v273_v29 = vadd.f32 %v272_v27, %v266_v24 }
  0x66   :  { %v274_v14 = vadd.f32 %v273_v29, %v267_v26 }
  0x68   :  { %v275_v31 = vadd.f32 %v274_v14, %v268_v28 }
  0x6a   :  { %v276_v32 = vadd.f32 %v275_v31, %v269_v30 }
  0x6c   :  { %277 = vadd.xlane.f32.xlu0 %v276_v32 }
  0x6d   :  { %422 = shalt.err (!%p419_p8)
}
  0x6e   :  { %s423_s30 = scalar_lea.hbm %s664_s5, 1024 }
  0x6f   :  { %p424_p9 = scmp.ne.s32.totalorder %s664_s5, %s423_s30  ;;  %p427_p10 = scmp.lt.u32.totalorder %s423_s30, %s664_s5 }
  0x71   :  { %p429_p11 = pnand %p427_p10, %p424_p9 }
  0x73   :  { %432 = shalt.err (!%p429_p11)
}
  0x74   :  { %291 = dma.vmem_to_hbm [thread:$0]  %s289_s23, 1024, %s664_s5, [#allocation4]  }
  0x75   :  { %s433_s27 = scalar_lea.vmem %s299_s25, 1024  ;;  %p438_p13 = scmp.lt.s32.totalorder %s299_s25, %s299_s25 }
  0x76   :  { %p434_p12 = scmp.ne.s32.totalorder %s299_s25, %s433_s27  ;;  %p439_p0 = scmp.lt.s32.totalorder %s433_s27, %s433_s27 }
  0x78   :  { %p440_p1 = por %p439_p0, %p438_p13 }
  0x7a   :  { %p441_p2 = pnand %p440_p1, %p434_p12 }
  0x7c   :  { %444 = shalt.err (!%p441_p2)
}
  0x7d   :  { %s445_s15 = scalar_lea.hbm %s665_s6, 1024 }
  0x7e   :  { %p446_p3 = scmp.ne.s32.totalorder %s665_s6, %s445_s15  ;;  %p449_p4 = scmp.lt.u32.totalorder %s445_s15, %s665_s6 }
  0x80   :  { %p451_p5 = pnand %p449_p4, %p446_p3 }
  0x82   :  { %454 = shalt.err (!%p451_p5)
}
  0x83   :  { %301 = dma.vmem_to_hbm [thread:$0]  %s299_s25, 1024, %s665_s6, [#allocation12]   ;;  %vm280_vm0 = vcmask 7168  }
  0xf9   :  { %v278_v2 = vpop.xlane.xlu0 %277 }
  0xfa   :  { %v279_v3 = vmul.f32 0.0009765625, %v278_v2 }
  0xfc   :  { %281 = vst.msk [vmem:[%s666_s7] sm:$0xff] %vm280_vm0, %v279_v3 }
  0xfd   :  { %461 = dma.done.wait [#allocation4], 1024  }
  0xfe   :  { %462 = vsyncadd [#allocation4], 4294966272 }
  0xff   :  { %463 = dma.done.wait [#allocation12], 1024  }
 0x100   :  { %464 = vsyncadd [#allocation12], 4294966272 }
 0x101   :  { %312 = vsyncpa [#allocation3], 1 }
 0x102   :  { %313 = vsyncpa [#allocation6], 1 }
 0x103   :  { %314 = vsyncpa [#allocation9], 1 }
 0x104   :  { %315 = vsyncpa [#allocation4], 1 }
 0x105   :  { %316 = vsyncpa [#allocation12], 1 }

</bundles_post_ra>
